<compile_context>
chip_gen: v7x
topology: tpu7x:2x2x1
jax: 0.10.0
libtpu: 0.0.40
codegen_flags: <defaults>
</compile_context>

<pallas_src>
import jax
import jax.numpy as jnp
from jax import lax
from jax.experimental import pallas as pl
from jax.experimental.pallas import tpu as pltpu

# PyTorch-native layer shapes: W is (out_features, in_features), b is (out_features,)
LAYER_SIZES = [(128, 5), (64, 128), (32, 64), (16, 32), (1, 16)]

TILE_BATCH = 4096                 # lanes per grid step (multiple of 128)
VMEM_LIMIT_BYTES = 32 * 1024 * 1024   # safe on v5e/v6e (128 MiB phys) and v7x (64 MiB phys)


def _round_up(n, m):
    return ((n + m - 1) // m) * m


def ann2_kernel(x_ref,
                w1_ref, b1_ref,
                w2_ref, b2_ref,
                w3_ref, b3_ref,
                w4_ref, b4_ref,
                w5_ref, b5_ref,
                o_ref):
    # Compute dtype of the MXU operands comes from the weights (bf16 or f32); accumulation is f32.
    cd = w1_ref.dtype

    # Layer 1: contract the feature dim (last) of both W1 (128,5) and the raw (TB,5) input block.
    # This consumes x in its natural (batch, 5) layout — no wrapper transpose/pad — while keeping
    # the batch on the lane axis of the result.
    x = x_ref[...].astype(cd)                                               # (TB, 5)
    h = lax.dot_general(w1_ref[...], x, (((1,), (1,)), ((), ())),
                        preferred_element_type=jnp.float32)                 # (128, TB) f32
    h = jnp.maximum(h + b1_ref[...], 0.0)

    # Layers 2-4: (out,in) @ (in,TB) MXU matmuls; bias-add + ReLU on the VPU in f32, activations
    # re-cast to the compute dtype (bf16) between layers to halve ld/st bytes and vreg pressure.
    h = jnp.maximum(jnp.dot(w2_ref[...], h.astype(cd),
                            preferred_element_type=jnp.float32) + b2_ref[...], 0.0)   # (64, TB)
    h = jnp.maximum(jnp.dot(w3_ref[...], h.astype(cd),
                            preferred_element_type=jnp.float32) + b3_ref[...], 0.0)   # (32, TB)
    h = jnp.maximum(jnp.dot(w4_ref[...], h.astype(cd),
                            preferred_element_type=jnp.float32) + b4_ref[...], 0.0)   # (16, TB)

    # Head (1x16): off the MXU — VPU multiply + sublane (XLU) reduce, all in f32.
    out = jnp.sum(w5_ref[...] * h, axis=0, keepdims=True) + b5_ref[...]     # (1, TB)
    o_ref[...] = out.astype(o_ref.dtype)


def ann2_forward(x, params, *, use_bf16=True):
    """x: (batch, 5) float32. params: list of (W, b) with PyTorch layout W (out, in), b (out,).

    Returns (batch, 1) float32, matching ANN2.forward.
    """
    x = jnp.asarray(x, jnp.float32)
    batch = x.shape[0]

    # Lane tile: multiple of 128, capped at TILE_BATCH; aim for >=2 grid steps on medium batches
    # so both v7x TensorCores get work under dimension_semantics=("parallel",).
    tb = min(TILE_BATCH, _round_up(max((batch + 1) // 2, 1), 128))

    # Only pad when the whole batch is smaller than one tile (tiny, few-KB cost). Larger ragged
    # batches use Pallas edge blocks: out-of-range input rows are never written back, and every
    # output column depends only on its own input column.
    padded_batch = max(batch, tb)
    if padded_batch > batch:
        x = jnp.pad(x, ((0, padded_batch - batch), (0, 0)))
    grid = (pl.cdiv(padded_batch, tb),)

    cd = jnp.bfloat16 if use_bf16 else jnp.float32

    flat_args = [x]
    in_specs = [pl.BlockSpec((tb, 5), lambda i: (i, 0))]
    n_layers = len(params)
    for li, (w, b) in enumerate(params):
        out_f, in_f = w.shape
        if li == n_layers - 1:
            # Head weight stays f32 and is laid out (in_f, 1) for the VPU multiply + sublane reduce.
            w_arg = jnp.asarray(w, jnp.float32).reshape(in_f, 1)
            w_spec = pl.BlockSpec((in_f, 1), lambda i: (0, 0))
        else:
            w_arg = jnp.asarray(w, cd)
            w_spec = pl.BlockSpec((out_f, in_f), lambda i: (0, 0))
        b_arg = jnp.asarray(b, jnp.float32).reshape(out_f, 1)   # broadcast over lanes
        flat_args.extend([w_arg, b_arg])
        # Constant index_maps: weights/biases stay VMEM-resident across grid steps.
        in_specs.append(w_spec)
        in_specs.append(pl.BlockSpec((out_f, 1), lambda i: (0, 0)))

    out_t = pl.pallas_call(
        ann2_kernel,
        out_shape=jax.ShapeDtypeStruct((1, padded_batch), jnp.float32),
        grid=grid,
        in_specs=in_specs,
        out_specs=pl.BlockSpec((1, tb), lambda i: (0, i)),
        compiler_params=pltpu.CompilerParams(
            dimension_semantics=("parallel",),
            vmem_limit_bytes=VMEM_LIMIT_BYTES,
        ),
    )(*flat_args)

    # (1, batch) -> (batch, 1); pure reshape (same bytes), no transpose cost.
    return out_t[:, :batch].reshape(batch, 1)


def init_params(key):
    """Deterministic init mimicking PyTorch Linear default (uniform +/- 1/sqrt(fan_in)).

    Weights kept in PyTorch-native layout: W (out_features, in_features), b (out_features,).
    """
    params = []
    for (fan_out, fan_in) in LAYER_SIZES:
        key, kw, kb = jax.random.split(key, 3)
        bound = 1.0 / jnp.sqrt(jnp.float32(fan_in))
        w = jax.random.uniform(kw, (fan_out, fan_in), jnp.float32, -bound, bound)
        b = jax.random.uniform(kb, (fan_out,), jnp.float32, -bound, bound)
        params.append((w, b))
    return params


def reference_forward(x, params):
    h = x
    for i, (w, b) in enumerate(params):
        h = h @ w.T + b
        if i < len(params) - 1:
            h = jnp.maximum(h, 0.0)
    return h


if __name__ == "__main__":
    key = jax.random.PRNGKey(0)
    key, kx = jax.random.split(key)
    batch = 8
    x = jax.random.normal(kx, (batch, 5), jnp.float32)

    params = init_params(key)
    ref = reference_forward(x, params)

    # Exact f32 path: tight check against the pure-JAX reference.
    out_f32 = jax.block_until_ready(ann2_forward(x, params, use_bf16=False))
    assert out_f32.shape == (batch, 1), out_f32.shape
    assert jnp.allclose(out_f32, ref, atol=1e-5, rtol=1e-5), (out_f32, ref)

    # Default bf16-matmul path: looser tolerance (bf16 operands, f32 accumulation).
    out_bf16 = jax.block_until_ready(ann2_forward(x, params, use_bf16=True))
    assert out_bf16.shape == (batch, 1), out_bf16.shape
    assert jnp.allclose(out_bf16, ref, atol=5e-2, rtol=5e-2), (out_bf16, ref)

    # Ragged batch spanning multiple grid steps (edge blocks; both TCs on v7x).
    key, kx2 = jax.random.split(key)
    x2 = jax.random.normal(kx2, (1037, 5), jnp.float32)
    out2 = jax.block_until_ready(ann2_forward(x2, params, use_bf16=True))
    ref2 = reference_forward(x2, params)
    assert out2.shape == (1037, 1), out2.shape
    assert jnp.allclose(out2, ref2, atol=5e-2, rtol=5e-2)

    print("KERNEL_OK")
</pallas_src>

<mosaic_0001>
module attributes {stable_mosaic.version = 11 : i64} {
  func.func @ann2_kernel(%arg0: i32, %arg1: memref<128x5xf32, #tpu.memory_space<vmem>>, %arg2: memref<128x5xf32, #tpu.memory_space<vmem>>, %arg3: memref<128x1xf32, #tpu.memory_space<vmem>>, %arg4: memref<64x128xf32, #tpu.memory_space<vmem>>, %arg5: memref<64x1xf32, #tpu.memory_space<vmem>>, %arg6: memref<32x64xf32, #tpu.memory_space<vmem>>, %arg7: memref<32x1xf32, #tpu.memory_space<vmem>>, %arg8: memref<16x32xf32, #tpu.memory_space<vmem>>, %arg9: memref<16x1xf32, #tpu.memory_space<vmem>>, %arg10: memref<16x1xf32, #tpu.memory_space<vmem>>, %arg11: memref<1x1xf32, #tpu.memory_space<vmem>>, %arg12: memref<1x128xf32, #tpu.memory_space<vmem>>) attributes {dimension_semantics = [#tpu.dimension_semantics<parallel>], iteration_bounds = array<i64: 1>, scalar_prefetch = 0 : i64, scratch_operands = 0 : i64, tpu.core_type = #tpu.core_type<tc>, window_params = [{transform_indices = @transform_0, window_bounds = array<i64: 128, 5>}, {pipeline_mode = #tpu.pipeline_mode<synchronous>, transform_indices = @transform_1, window_bounds = array<i64: 128, 5>}, {pipeline_mode = #tpu.pipeline_mode<synchronous>, transform_indices = @transform_2, window_bounds = array<i64: 128, 1>}, {pipeline_mode = #tpu.pipeline_mode<synchronous>, transform_indices = @transform_3, window_bounds = array<i64: 64, 128>}, {pipeline_mode = #tpu.pipeline_mode<synchronous>, transform_indices = @transform_4, window_bounds = array<i64: 64, 1>}, {pipeline_mode = #tpu.pipeline_mode<synchronous>, transform_indices = @transform_5, window_bounds = array<i64: 32, 64>}, {pipeline_mode = #tpu.pipeline_mode<synchronous>, transform_indices = @transform_6, window_bounds = array<i64: 32, 1>}, {pipeline_mode = #tpu.pipeline_mode<synchronous>, transform_indices = @transform_7, window_bounds = array<i64: 16, 32>}, {pipeline_mode = #tpu.pipeline_mode<synchronous>, transform_indices = @transform_8, window_bounds = array<i64: 16, 1>}, {pipeline_mode = #tpu.pipeline_mode<synchronous>, transform_indices = @transform_9, window_bounds = array<i64: 16, 1>}, {pipeline_mode = #tpu.pipeline_mode<synchronous>, transform_indices = @transform_10, window_bounds = array<i64: 1, 1>}, {transform_indices = @transform_11, window_bounds = array<i64: 1, 128>}]} {
    %c0 = arith.constant 0 : index
    %c0_0 = arith.constant 0 : index
    %0 = vector.load %arg1[%c0, %c0_0] : memref<128x5xf32, #tpu.memory_space<vmem>>, vector<128x5xf32>
    %c0_1 = arith.constant 0 : index
    %c0_2 = arith.constant 0 : index
    %1 = vector.load %arg2[%c0_1, %c0_2] : memref<128x5xf32, #tpu.memory_space<vmem>>, vector<128x5xf32>
    %cst = arith.constant dense<0.000000e+00> : vector<128x128xf32>
    %2 = tpu.matmul %1, %0, %cst {dimension_numbers = #tpu.dot_dimension_numbers<[1], [1], [0], [0], [0, 0, 1, 0], [], []>} : vector<128x5xf32>, vector<128x5xf32>, vector<128x128xf32> -> vector<128x128xf32>
    %c0_3 = arith.constant 0 : index
    %c0_4 = arith.constant 0 : index
    %3 = vector.load %arg3[%c0_3, %c0_4] : memref<128x1xf32, #tpu.memory_space<vmem>>, vector<128x1xf32>
    %4 = vector.broadcast %3 : vector<128x1xf32> to vector<128x128xf32>
    %5 = arith.addf %2, %4 : vector<128x128xf32>
    %cst_5 = arith.constant 0.000000e+00 : f32
    %6 = vector.broadcast %cst_5 : f32 to vector<128x128xf32>
    %7 = arith.maximumf %5, %6 : vector<128x128xf32>
    %c0_6 = arith.constant 0 : index
    %c0_7 = arith.constant 0 : index
    %8 = vector.load %arg4[%c0_6, %c0_7] : memref<64x128xf32, #tpu.memory_space<vmem>>, vector<64x128xf32>
    %cst_8 = arith.constant dense<0.000000e+00> : vector<64x128xf32>
    %9 = tpu.matmul %8, %7, %cst_8 {dimension_numbers = #tpu.dot_dimension_numbers<[1], [0], [0], [1], [0, 0, 1, 1], [], []>} : vector<64x128xf32>, vector<128x128xf32>, vector<64x128xf32> -> vector<64x128xf32>
    %c0_9 = arith.constant 0 : index
    %c0_10 = arith.constant 0 : index
    %10 = vector.load %arg5[%c0_9, %c0_10] : memref<64x1xf32, #tpu.memory_space<vmem>>, vector<64x1xf32>
    %11 = vector.broadcast %10 : vector<64x1xf32> to vector<64x128xf32>
    %12 = arith.addf %9, %11 : vector<64x128xf32>
    %cst_11 = arith.constant 0.000000e+00 : f32
    %13 = vector.broadcast %cst_11 : f32 to vector<64x128xf32>
    %14 = arith.maximumf %12, %13 : vector<64x128xf32>
    %c0_12 = arith.constant 0 : index
    %c0_13 = arith.constant 0 : index
    %15 = vector.load %arg6[%c0_12, %c0_13] : memref<32x64xf32, #tpu.memory_space<vmem>>, vector<32x64xf32>
    %cst_14 = arith.constant dense<0.000000e+00> : vector<32x128xf32>
    %16 = tpu.matmul %15, %14, %cst_14 {dimension_numbers = #tpu.dot_dimension_numbers<[1], [0], [0], [1], [0, 0, 1, 1], [], []>} : vector<32x64xf32>, vector<64x128xf32>, vector<32x128xf32> -> vector<32x128xf32>
    %c0_15 = arith.constant 0 : index
    %c0_16 = arith.constant 0 : index
    %17 = vector.load %arg7[%c0_15, %c0_16] : memref<32x1xf32, #tpu.memory_space<vmem>>, vector<32x1xf32>
    %18 = vector.broadcast %17 : vector<32x1xf32> to vector<32x128xf32>
    %19 = arith.addf %16, %18 : vector<32x128xf32>
    %cst_17 = arith.constant 0.000000e+00 : f32
    %20 = vector.broadcast %cst_17 : f32 to vector<32x128xf32>
    %21 = arith.maximumf %19, %20 : vector<32x128xf32>
    %c0_18 = arith.constant 0 : index
    %c0_19 = arith.constant 0 : index
    %22 = vector.load %arg8[%c0_18, %c0_19] : memref<16x32xf32, #tpu.memory_space<vmem>>, vector<16x32xf32>
    %cst_20 = arith.constant dense<0.000000e+00> : vector<16x128xf32>
    %23 = tpu.matmul %22, %21, %cst_20 {dimension_numbers = #tpu.dot_dimension_numbers<[1], [0], [0], [1], [0, 0, 1, 1], [], []>} : vector<16x32xf32>, vector<32x128xf32>, vector<16x128xf32> -> vector<16x128xf32>
    %c0_21 = arith.constant 0 : index
    %c0_22 = arith.constant 0 : index
    %24 = vector.load %arg9[%c0_21, %c0_22] : memref<16x1xf32, #tpu.memory_space<vmem>>, vector<16x1xf32>
    %25 = vector.broadcast %24 : vector<16x1xf32> to vector<16x128xf32>
    %26 = arith.addf %23, %25 : vector<16x128xf32>
    %cst_23 = arith.constant 0.000000e+00 : f32
    %27 = vector.broadcast %cst_23 : f32 to vector<16x128xf32>
    %28 = arith.maximumf %26, %27 : vector<16x128xf32>
    %c0_24 = arith.constant 0 : index
    %c0_25 = arith.constant 0 : index
    %29 = vector.load %arg10[%c0_24, %c0_25] : memref<16x1xf32, #tpu.memory_space<vmem>>, vector<16x1xf32>
    %30 = vector.broadcast %29 : vector<16x1xf32> to vector<16x128xf32>
    %31 = arith.mulf %30, %28 : vector<16x128xf32>
    %cst_26 = arith.constant dense<0.000000e+00> : vector<128xf32>
    %32 = vector.multi_reduction <add>, %31, %cst_26 [0] : vector<16x128xf32> to vector<128xf32>
    %33 = vector.shape_cast %32 : vector<128xf32> to vector<1x128xf32>
    %c0_27 = arith.constant 0 : index
    %c0_28 = arith.constant 0 : index
    %34 = vector.load %arg11[%c0_27, %c0_28] : memref<1x1xf32, #tpu.memory_space<vmem>>, vector<1x1xf32>
    %35 = vector.broadcast %34 : vector<1x1xf32> to vector<1x128xf32>
    %36 = arith.addf %33, %35 : vector<1x128xf32>
    %c0_29 = arith.constant 0 : index
    %c0_30 = arith.constant 0 : index
    %37 = vector.load %arg12[%c0_29, %c0_30] : memref<1x128xf32, #tpu.memory_space<vmem>>, vector<1x128xf32>
    tpu.vector_store %arg12[%c0_29, %c0_30], %36 {strides = array<i32>} : memref<1x128xf32, #tpu.memory_space<vmem>>, vector<1x128xf32>,
    return
  }
  func.func @transform_0(%arg0: i32) -> (i32, i32) {
    %c0_i32 = arith.constant 0 : i32
    %c0_i32_0 = arith.constant 0 : i32
    return %arg0, %c0_i32 : i32, i32
  }
  func.func @transform_1(%arg0: i32) -> (i32, i32) {
    %c0_i32 = arith.constant 0 : i32
    %c0_i32_0 = arith.constant 0 : i32
    %c0_i32_1 = arith.constant 0 : i32
    return %c0_i32, %c0_i32_0 : i32, i32
  }
  func.func @transform_2(%arg0: i32) -> (i32, i32) {
    %c0_i32 = arith.constant 0 : i32
    %c0_i32_0 = arith.constant 0 : i32
    %c0_i32_1 = arith.constant 0 : i32
    return %c0_i32, %c0_i32_0 : i32, i32
  }
  func.func @transform_3(%arg0: i32) -> (i32, i32) {
    %c0_i32 = arith.constant 0 : i32
    %c0_i32_0 = arith.constant 0 : i32
    %c0_i32_1 = arith.constant 0 : i32
    return %c0_i32, %c0_i32_0 : i32, i32
  }
  func.func @transform_4(%arg0: i32) -> (i32, i32) {
    %c0_i32 = arith.constant 0 : i32
    %c0_i32_0 = arith.constant 0 : i32
    %c0_i32_1 = arith.constant 0 : i32
    return %c0_i32, %c0_i32_0 : i32, i32
  }
  func.func @transform_5(%arg0: i32) -> (i32, i32) {
    %c0_i32 = arith.constant 0 : i32
    %c0_i32_0 = arith.constant 0 : i32
    %c0_i32_1 = arith.constant 0 : i32
    return %c0_i32, %c0_i32_0 : i32, i32
  }
  func.func @transform_6(%arg0: i32) -> (i32, i32) {
    %c0_i32 = arith.constant 0 : i32
    %c0_i32_0 = arith.constant 0 : i32
    %c0_i32_1 = arith.constant 0 : i32
    return %c0_i32, %c0_i32_0 : i32, i32
  }
  func.func @transform_7(%arg0: i32) -> (i32, i32) {
    %c0_i32 = arith.constant 0 : i32
    %c0_i32_0 = arith.constant 0 : i32
    %c0_i32_1 = arith.constant 0 : i32
    return %c0_i32, %c0_i32_0 : i32, i32
  }
  func.func @transform_8(%arg0: i32) -> (i32, i32) {
    %c0_i32 = arith.constant 0 : i32
    %c0_i32_0 = arith.constant 0 : i32
    %c0_i32_1 = arith.constant 0 : i32
    return %c0_i32, %c0_i32_0 : i32, i32
  }
  func.func @transform_9(%arg0: i32) -> (i32, i32) {
    %c0_i32 = arith.constant 0 : i32
    %c0_i32_0 = arith.constant 0 : i32
    %c0_i32_1 = arith.constant 0 : i32
    return %c0_i32, %c0_i32_0 : i32, i32
  }
  func.func @transform_10(%arg0: i32) -> (i32, i32) {
    %c0_i32 = arith.constant 0 : i32
    %c0_i32_0 = arith.constant 0 : i32
    %c0_i32_1 = arith.constant 0 : i32
    return %c0_i32, %c0_i32_0 : i32, i32
  }
  func.func @transform_11(%arg0: i32) -> (i32, i32) {
    %c0_i32 = arith.constant 0 : i32
    %c0_i32_0 = arith.constant 0 : i32
    return %c0_i32, %arg0 : i32, i32
  }
}

</mosaic_0001>

<bundles_post_ra>
// kernel: tpu_custom_call.1
= control target key start
LH: loop header
LB: loop body
LE: loop exit
PB: predicated region body
PF: predicated region fallthrough
CT: control target
= control target key end

     0   :  { %s1619_s0 = inlined_call_operand.vmem [shape: f32[128,5], index: 0, kind: input, shape index: {}]   ;;  %s1620_s1 = inlined_call_operand.vmem [shape: f32[128,5], index: 1, kind: input, shape index: {}]   ;;  %s1621_s2 = inlined_call_operand.vmem [shape: f32[128,1], index: 2, kind: input, shape index: {}]   ;;  %s1622_s3 = inlined_call_operand.vmem [shape: f32[64,128], index: 3, kind: input, shape index: {}]   ;;  %s1623_s4 = inlined_call_operand.vmem [shape: f32[64,1], index: 4, kind: input, shape index: {}]   ;;  %s1624_s5 = inlined_call_operand.vmem [shape: f32[32,64], index: 5, kind: input, shape index: {}]   ;;  %s1625_s6 = inlined_call_operand.vmem [shape: f32[32,1], index: 6, kind: input, shape index: {}]   ;;  %s1626_s7 = inlined_call_operand.vmem [shape: f32[16,32], index: 7, kind: input, shape index: {}]   ;;  %s1627_s8 = inlined_call_operand.vmem [shape: f32[16,1], index: 8, kind: input, shape index: {}]   ;;  %s1628_s9 = inlined_call_operand.vmem [shape: f32[16,1], index: 9, kind: input, shape index: {}]   ;;  %s1629_s10 = inlined_call_operand.<no memory space> [shape: f32[1,1], index: 10, kind: input, shape index: {}]   ;;  %s1630_s11 = inlined_call_operand.hbm [shape: f32[1,128], index: 11, kind: output, shape index: {}]  }
   0x1   :  { %v16_v0 = vstv %s1629_s10 }
   0x2   :  { %17 = vst [vmem:[#allocation2] sm:$0x1] %v16_v0 }
   0x3   :  { %v41_v1 = vld [vmem:[%s1619_s0] sm:$0xff]  ;;  %v42_v2 = vld [vmem:[%s1619_s0 + $0x8] sm:$0xff]  ;;  %vm169_vm0 = vcmask 39936   ;;  %v43_v3 = vld [vmem:[%s1619_s0 + $0x10] sm:$0xff]  ;;  %v1248_v7 = vmov 0  }
   0x4   :  { %v1116_v4 = vpack.c.bf16 %v42_v2, %v41_v1  ;;  %vm1324_vm1 = vmpackc.low %vm169_vm0, %vm169_vm0  ;;  %v44_v6 = vld [vmem:[%s1619_s0 + $0x18] sm:$0xff]  ;;  %1222 = vset.pattern.permute.xlu0 %v1248_v7  ;;  %1223 = vset.pattern.permute.xlu1 %v1248_v7  ;;  %v57_v9 = vld [vmem:[%s1620_s1] sm:$0xff] }
   0x5   :  { %v1122_v8 = vpack.c.bf16 %v44_v6, %v43_v3  ;;  %v45_v10 = vld [vmem:[%s1619_s0 + $0x20] sm:$0xff]  ;;  %v46_v11 = vld [vmem:[%s1619_s0 + $0x28] sm:$0xff]  ;;  %1015 = vmatprep.mubr.msk.f32.mxu0 %vm169_vm0, %v57_v9  ;;  %v75_v15 = vld [vmem:[%s1621_s2 + $0x10] sm:$0xff] }
   0x6   :  { %1118 = vmatprep.subr.msk.bf16.mxu0 %vm1324_vm1, %v1116_v4  ;;  %v1128_v12 = vpack.c.bf16 %v46_v11, %v45_v10  ;;  %v73_v13 = vld [vmem:[%s1621_s2] sm:$0xff]  ;;  %v74_v14 = vld [vmem:[%s1621_s2 + $0x8] sm:$0xff]  ;;  %101 = vperm.xlu1 %1223, %v75_v15   ;;  %v76_v16 = vld [vmem:[%s1621_s2 + $0x18] sm:$0xff] }
   0x7   :  { %1121 = vmatpush3.bf16.xpose.msk.msra.mxu0 %vm1324_vm1, %v1116_v4  ;;  %91 = vperm.xlu0 %1222, %v73_v13   ;;  %v47_v17 = vld [vmem:[%s1619_s0 + $0x30] sm:$0xff]  ;;  %v48_v18 = vld [vmem:[%s1619_s0 + $0x38] sm:$0xff]  ;;  %v77_v19 = vld [vmem:[%s1621_s2 + $0x20] sm:$0xff] }
   0x8   :  { %1124 = vmatprep.subr.msk.bf16.mxu0 %vm1324_vm1, %v1122_v8  ;;  %v1134_v20 = vpack.c.bf16 %v48_v18, %v47_v17  ;;  %v78_v21 = vld [vmem:[%s1621_s2 + $0x28] sm:$0xff]  ;;  %v79_v22 = vld [vmem:[%s1621_s2 + $0x30] sm:$0xff]  ;;  %v80_v23 = vld [vmem:[%s1621_s2 + $0x38] sm:$0xff] }
   0x9   :  { %v49_v24 = vld [vmem:[%s1619_s0 + $0x40] sm:$0xff]  ;;  %v50_v25 = vld [vmem:[%s1619_s0 + $0x48] sm:$0xff] }
   0xa   :  { %106 = vperm.xlu1 %1223, %v76_v16  }
   0xb   :  { %96 = vperm.xlu0 %1222, %v74_v14  }
   0xe   :  { %116 = vperm.xlu1 %1223, %v78_v21  }
   0xf   :  { %1127 = vmatpush3.bf16.xpose.msk.msra.mxu0 %vm1324_vm1, %v1122_v8  ;;  %111 = vperm.xlu0 %1222, %v77_v19  }
  0x10   :  { %1130 = vmatprep.subr.msk.bf16.mxu0 %vm1324_vm1, %v1128_v12 }
  0x13   :  { %121 = vperm.xlu0 %1222, %v79_v22  }
  0x17   :  { %1133 = vmatpush3.bf16.xpose.msk.msra.mxu0 %vm1324_vm1, %v1128_v12 }
  0x18   :  { %1136 = vmatprep.subr.msk.bf16.mxu0 %vm1324_vm1, %v1134_v20 }
  0x19   :  { %18 = vsyncpa [#allocation4], 0  ;;  %v81_v26 = vld [vmem:[%s1621_s2 + $0x40] sm:$0xff]  ;;  %126 = vperm.xlu1 %1223, %v80_v23   ;;  %v1140_v27 = vpack.c.bf16 %v50_v25, %v49_v24  ;;  %v82_v28 = vld [vmem:[%s1621_s2 + $0x48] sm:$0xff]  ;;  %vm624_vm2 = vcmask 523264   ;;  %vm740_vm3 = vcmask 261120  }
  0x1a   :  { %131 = vperm.xlu0 %1222, %v81_v26   ;;  %v83_v29 = vld [vmem:[%s1621_s2 + $0x50] sm:$0xff]  ;;  %v84_v30 = vld [vmem:[%s1621_s2 + $0x58] sm:$0xff]  ;;  %v85_v33 = vld [vmem:[%s1621_s2 + $0x60] sm:$0xff] }
  0x1b   :  { %v51_v31 = vld [vmem:[%s1619_s0 + $0x50] sm:$0xff]  ;;  %v52_v32 = vld [vmem:[%s1619_s0 + $0x58] sm:$0xff]  ;;  %v86_v35 = vld [vmem:[%s1621_s2 + $0x68] sm:$0xff] }
  0x1c   :  { %v1146_v34 = vpack.c.bf16 %v52_v32, %v51_v31  ;;  %v87_v36 = vld [vmem:[%s1621_s2 + $0x70] sm:$0xff]  ;;  %v88_v37 = vld [vmem:[%s1621_s2 + $0x78] sm:$0xff]  ;;  %v53_v38 = vld [vmem:[%s1619_s0 + $0x60] sm:$0xff] }
  0x1d   :  { %136 = vperm.xlu1 %1223, %v82_v28   ;;  %v54_v39 = vld [vmem:[%s1619_s0 + $0x68] sm:$0xff]  ;;  %v435_v40 = vld [vmem:[%s1623_s4] sm:$0xff]  ;;  %v437_v43 = vld [vmem:[%s1623_s4 + $0x10] sm:$0xff] }
  0x1e   :  { %141 = vperm.xlu0 %1222, %v83_v29   ;;  %v1152_v41 = vpack.c.bf16 %v54_v39, %v53_v38  ;;  %v436_v42 = vld [vmem:[%s1623_s4 + $0x8] sm:$0xff]  ;;  %v438_v44 = vld [vmem:[%s1623_s4 + $0x18] sm:$0xff]  ;;  %v55_v45 = vld [vmem:[%s1619_s0 + $0x70] sm:$0xff] }
  0x1f   :  { %1139 = vmatpush3.bf16.xpose.msk.msra.mxu0 %vm1324_vm1, %v1134_v20  ;;  %v56_v46 = vld [vmem:[%s1619_s0 + $0x78] sm:$0xff]  ;;  %v439_v47 = vld [vmem:[%s1623_s4 + $0x20] sm:$0xff]  ;;  %v440_v49 = vld [vmem:[%s1623_s4 + $0x28] sm:$0xff] }
  0x20   :  { %1142 = vmatprep.subr.msk.bf16.mxu0 %vm1324_vm1, %v1140_v27  ;;  %v1158_v48 = vpack.c.bf16 %v56_v46, %v55_v45  ;;  %v441_v50 = vld [vmem:[%s1623_s4 + $0x30] sm:$0xff]  ;;  %v442_v51 = vld [vmem:[%s1623_s4 + $0x38] sm:$0xff]  ;;  %v600_v52 = vld [vmem:[%s1625_s6] sm:$0xff] }
  0x21   :  { %146 = vperm.xlu1 %1223, %v84_v30   ;;  %v601_v53 = vld [vmem:[%s1625_s6 + $0x8] sm:$0xff]  ;;  %v602_v54 = vld [vmem:[%s1625_s6 + $0x10] sm:$0xff]  ;;  %v603_v55 = vld [vmem:[%s1625_s6 + $0x18] sm:$0xff] }
  0x22   :  { %151 = vperm.xlu0 %1222, %v85_v33   ;;  %v728_v56 = vld [vmem:[%s1627_s8] sm:$0xff]  ;;  %v58_v57 = vld [vmem:[%s1620_s1 + $0x8] sm:$0xff]  ;;  %v59_v58 = vld [vmem:[%s1620_s1 + $0x10] sm:$0xff] }
  0x23   :  { %v729_v59 = vld [vmem:[%s1627_s8 + $0x8] sm:$0xff]  ;;  %v824_v60 = vld [vmem:[%s1628_s9] sm:$0xff]  ;;  %v60_v61 = vld [vmem:[%s1620_s1 + $0x18] sm:$0xff] }
  0x24   :  { %v61_v62 = vld [vmem:[%s1620_s1 + $0x20] sm:$0xff]  ;;  %v825_v63 = vld [vmem:[%s1628_s9 + $0x8] sm:$0xff]  ;;  %v63_v2 = vld [vmem:[%s1620_s1 + $0x30] sm:$0xff] }
  0x25   :  { %156 = vperm.xlu1 %1223, %v86_v35   ;;  %v845_v0 = vld [vmem:[#allocation2] sm:$0x1]  ;;  %v62_v1 = vld [vmem:[%s1620_s1 + $0x28] sm:$0xff]  ;;  %v64_v3 = vld [vmem:[%s1620_s1 + $0x38] sm:$0xff] }
  0x26   :  { %161 = vperm.xlu0 %1222, %v87_v36   ;;  %v65_v4 = vld [vmem:[%s1620_s1 + $0x40] sm:$0xff]  ;;  %v66_v5 = vld [vmem:[%s1620_s1 + $0x48] sm:$0xff]  ;;  %v67_v6 = vld [vmem:[%s1620_s1 + $0x50] sm:$0xff] }
  0x27   :  { %1145 = vmatpush3.bf16.xpose.msk.msra.mxu0 %vm1324_vm1, %v1140_v27  ;;  %v68_v7 = vld [vmem:[%s1620_s1 + $0x58] sm:$0xff]  ;;  %v69_v8 = vld [vmem:[%s1620_s1 + $0x60] sm:$0xff]  ;;  %v70_v9 = vld [vmem:[%s1620_s1 + $0x68] sm:$0xff] }
  0x28   :  { %1148 = vmatprep.subr.msk.bf16.mxu0 %vm1324_vm1, %v1146_v34  ;;  %v71_v10 = vld [vmem:[%s1620_s1 + $0x70] sm:$0xff]  ;;  %v72_v11 = vld [vmem:[%s1620_s1 + $0x78] sm:$0xff]  ;;  %v427_v12 = vld [vmem:[%s1622_s3] sm:$0xff] }
  0x29   :  { %166 = vperm.xlu1 %1223, %v88_v37   ;;  %1071 = vmatprep.mubr.f32.mxu1 %v427_v12 }
  0x2a   :  { %445 = vperm.xlu0 %1222, %v435_v40  }
  0x2d   :  { %450 = vperm.xlu1 %1223, %v436_v42  }
  0x2e   :  { %455 = vperm.xlu0 %1222, %v437_v43  }
  0x2f   :  { %1151 = vmatpush3.bf16.xpose.msk.msra.mxu0 %vm1324_vm1, %v1146_v34 }
  0x30   :  { %1154 = vmatprep.subr.msk.bf16.mxu0 %vm1324_vm1, %v1152_v41 }
  0x31   :  { %460 = vperm.xlu1 %1223, %v438_v44  }
  0x32   :  { %465 = vperm.xlu0 %1222, %v439_v47  }
  0x35   :  { %470 = vperm.xlu1 %1223, %v440_v49  }
  0x36   :  { %475 = vperm.xlu0 %1222, %v441_v50  }
  0x37   :  { %1157 = vmatpush3.bf16.xpose.msk.msra.mxu0 %vm1324_vm1, %v1152_v41 }
  0x38   :  { %1160 = vmatprep.subr.msk.bf16.mxu0 %vm1324_vm1, %v1158_v48 }
  0x39   :  { %480 = vperm.xlu1 %1223, %v442_v51  }
  0x3a   :  { %606 = vperm.xlu0 %1222, %v600_v52  }
  0x3d   :  { %611 = vperm.xlu1 %1223, %v601_v53  }
  0x3e   :  { %616 = vperm.xlu0 %1222, %v602_v54  }
  0x3f   :  { %1163 = vmatpush3.bf16.xpose.msk.msra.mxu0 %vm1324_vm1, %v1158_v48 }
  0x41   :  { %621 = vperm.xlu1 %1223, %v603_v55  }
  0x42   :  { %732 = vperm.xlu0 %1222, %v728_v56  }
  0x45   :  { %737 = vperm.xlu1 %1223, %v729_v59  }
  0x46   :  { %1016 = vmatmul.mubr.msk.f32.vlgmr.msra.gmra.mrb[0].mxu0 %vm169_vm0, %v58_v57  ;;  %828 = vperm.xlu0 %1222, %v824_v60  }
  0x47   :  { %1018 = vmatprep.mubr.msk.f32.mxu0 %vm169_vm0, %v59_v58 }
  0x49   :  { %833 = vperm.xlu1 %1223, %v825_v63  }
  0x4a   :  { %1019 = vmatmul.mubr.msk.f32.gmra.mrb[2].mxu0 %vm169_vm0, %v60_v61  ;;  %848 = vperm.xlu0 %1222, %v845_v0  }
  0x4b   :  { %1021 = vmatprep.mubr.msk.f32.mxu0 %vm169_vm0, %v61_v62 }
  0x4e   :  { %1022 = vmatmul.mubr.msk.f32.gmra.mrb[4].mxu0 %vm169_vm0, %v62_v1 }
  0x4f   :  { %1024 = vmatprep.mubr.msk.f32.mxu0 %vm169_vm0, %v63_v2 }
  0x52   :  { %1025 = vmatmul.mubr.msk.f32.gmra.mrb[6].mxu0 %vm169_vm0, %v64_v3 }
  0x53   :  { %1027 = vmatprep.mubr.msk.f32.mxu0 %vm169_vm0, %v65_v4 }
  0x56   :  { %1028 = vmatmul.mubr.msk.f32.gmra.mrb[8].mxu0 %vm169_vm0, %v66_v5 }
  0x57   :  { %1030 = vmatprep.mubr.msk.f32.mxu0 %vm169_vm0, %v67_v6 }
  0x5a   :  { %1031 = vmatmul.mubr.msk.f32.gmra.mrb[10].mxu0 %vm169_vm0, %v68_v7 }
  0x5b   :  { %1033 = vmatprep.mubr.msk.f32.mxu0 %vm169_vm0, %v69_v8 }
  0x5e   :  { %1034 = vmatmul.mubr.msk.f32.gmra.mrb[12].mxu0 %vm169_vm0, %v70_v9 }
  0x5f   :  { %1036 = vmatprep.mubr.msk.f32.mxu0 %vm169_vm0, %v71_v10 }
  0x62   :  { %1037 = vmatmul.mubr.msk.f32.gmra.mrb[14].mxu0 %vm169_vm0, %v72_v11 }
  0x85   :  { %v102_v13 = vpop.permute.xlu1 %101 }
  0x86   :  { %v92_v14 = vpop.permute.xlu0 %91 }
  0x89   :  { %v107_v15 = vpop.permute.xlu1 %106 }
  0x8a   :  { %v97_v16 = vpop.permute.xlu0 %96 }
  0x8d   :  { %v117_v17 = vpop.permute.xlu1 %116 }
  0x8e   :  { %v112_v18 = vpop.permute.xlu0 %111 }
  0x92   :  { %v122_v27 = vpop.permute.xlu0 %121 }
  0x98   :  { %v127_v24 = vpop.permute.xlu1 %126 }
  0x99   :  { %v132_v40 = vpop.permute.xlu0 %131 }
  0x9c   :  { %v137_v37 = vpop.permute.xlu1 %136 }
  0x9d   :  { %v142_v52 = vpop.permute.xlu0 %141 }
  0xa0   :  { %v147_v49 = vpop.permute.xlu1 %146 }
  0xa1   :  { %v152_v1 = vpop.permute.xlu0 %151 }
  0xa4   :  { %v157_v62 = vpop.permute.xlu1 %156 }
  0xa8   :  { %v167_v10 = vpop.permute.xlu1 %166 }
 0x119   :  { %v1017_v19 = vpop.f32.mrb[0].mxu0 }
 0x11a   :  { %v338_v20 = vadd.f32 %v1017_v19, %v97_v16  ;;  %v332_v21 = vpop.f32.mrb[1].mxu0 }
 0x11b   :  { %v333_v22 = vadd.f32 %v332_v21, %v92_v14  ;;  %v428_v21 = vld [vmem:[%s1622_s3 + $0x8] sm:$0xff] }
 0x11c   :  { %v412_v23 = vmax.f32 %v338_v20, 0.0 }
 0x11d   :  { %v411_v25 = vmax.f32 %v333_v22, 0.0  ;;  %v1020_v26 = vpop.f32.mrb[2].mxu0  ;;  %v429_v22 = vld [vmem:[%s1622_s3 + $0x10] sm:$0xff] }
 0x11e   :  { %v348_v28 = vadd.f32 %v1020_v26, %v107_v15  ;;  %v342_v29 = vpop.f32.mrb[3].mxu0  ;;  %v433_v26 = vld [vmem:[%s1622_s3 + $0x30] sm:$0xff] }
 0x11f   :  { %v343_v30 = vadd.f32 %v342_v29, %v102_v13  ;;  %v1164_v31 = vpack.c.bf16 %v412_v23, %v411_v25  ;;  %v162_v13 = vpop.permute.xlu0 %161  ;;  %v430_v23 = vld [vmem:[%s1622_s3 + $0x18] sm:$0xff]  ;;  %v432_v25 = vld [vmem:[%s1622_s3 + $0x28] sm:$0xff]  ;;  %v451_v29 = vpop.permute.xlu1 %450 }
 0x120   :  { %v414_v32 = vmax.f32 %v348_v28, 0.0  ;;  %v596_v28 = vld [vmem:[%s1624_s5] sm:$0xff] }
 0x121   :  { %v413_v33 = vmax.f32 %v343_v30, 0.0  ;;  %v1023_v34 = vpop.f32.mrb[4].mxu0  ;;  %1165 = vmatprep.subr.bf16.mxu1 %v1164_v31 }
 0x122   :  { %v358_v35 = vadd.f32 %v1023_v34, %v117_v17  ;;  %v352_v36 = vpop.f32.mrb[5].mxu0  ;;  %1167 = vmatpush3.bf16.msra.mxu1 %v1164_v31 }
 0x123   :  { %v1168_v38 = vpack.c.bf16 %v414_v32, %v413_v33  ;;  %v353_v39 = vadd.f32 %v352_v36, %v112_v18  ;;  %v446_v30 = vpop.permute.xlu0 %445  ;;  %v461_v31 = vpop.permute.xlu1 %460 }
 0x124   :  { %v416_v41 = vmax.f32 %v358_v35, 0.0 }
 0x125   :  { %v415_v42 = vmax.f32 %v353_v39, 0.0  ;;  %v1026_v43 = vpop.f32.mrb[6].mxu0  ;;  %1169 = vmatprep.subr.bf16.mxu1 %v1168_v38 }
 0x126   :  { %v368_v44 = vadd.f32 %v1026_v43, %v127_v24  ;;  %v362_v45 = vpop.f32.mrb[7].mxu0  ;;  %1171 = vmatpush3.bf16.msra.mxu1 %v1168_v38  ;;  %v431_v24 = vld [vmem:[%s1622_s3 + $0x20] sm:$0xff] }
 0x127   :  { %v1172_v46 = vpack.c.bf16 %v416_v41, %v415_v42  ;;  %v363_v47 = vadd.f32 %v362_v45, %v122_v27  ;;  %v434_v27 = vld [vmem:[%s1622_s3 + $0x38] sm:$0xff]  ;;  %v456_v33 = vpop.permute.xlu0 %455  ;;  %v471_v42 = vpop.permute.xlu1 %470 }
 0x128   :  { %v418_v48 = vmax.f32 %v368_v44, 0.0 }
 0x129   :  { %v417_v50 = vmax.f32 %v363_v47, 0.0  ;;  %v1029_v51 = vpop.f32.mrb[8].mxu0  ;;  %1173 = vmatprep.subr.bf16.mxu1 %v1172_v46 }
 0x12a   :  { %v378_v53 = vadd.f32 %v1029_v51, %v137_v37  ;;  %v372_v54 = vpop.f32.mrb[9].mxu0  ;;  %1175 = vmatpush3.bf16.msra.mxu1 %v1172_v46 }
 0x12b   :  { %v1176_v55 = vpack.c.bf16 %v418_v48, %v417_v50  ;;  %v373_v56 = vadd.f32 %v372_v54, %v132_v40  ;;  %v466_v45 = vpop.permute.xlu0 %465  ;;  %v481_v54 = vpop.permute.xlu1 %480 }
 0x12c   :  { %v420_v57 = vmax.f32 %v378_v53, 0.0 }
 0x12d   :  { %v419_v58 = vmax.f32 %v373_v56, 0.0  ;;  %v1032_v59 = vpop.f32.mrb[10].mxu0  ;;  %1177 = vmatprep.subr.bf16.mxu1 %v1176_v55 }
 0x12e   :  { %v388_v60 = vadd.f32 %v1032_v59, %v147_v49  ;;  %v382_v61 = vpop.f32.mrb[11].mxu0  ;;  %1179 = vmatpush3.bf16.msra.mxu1 %v1176_v55 }
 0x12f   :  { %v1180_v63 = vpack.c.bf16 %v420_v57, %v419_v58  ;;  %v383_v0 = vadd.f32 %v382_v61, %v142_v52  ;;  %v476_v57 = vpop.permute.xlu0 %475 }
 0x130   :  { %v422_v2 = vmax.f32 %v388_v60, 0.0 }
 0x131   :  { %v421_v3 = vmax.f32 %v383_v0, 0.0  ;;  %v1035_v4 = vpop.f32.mrb[12].mxu0  ;;  %1181 = vmatprep.subr.bf16.mxu1 %v1180_v63 }
 0x132   :  { %v398_v5 = vadd.f32 %v1035_v4, %v157_v62  ;;  %v392_v6 = vpop.f32.mrb[13].mxu0  ;;  %1183 = vmatpush3.bf16.msra.mxu1 %v1180_v63  ;;  %v726_v4 = vld [vmem:[%s1626_s7] sm:$0xff] }
 0x133   :  { %v1184_v7 = vpack.c.bf16 %v422_v2, %v421_v3  ;;  %v393_v8 = vadd.f32 %v392_v6, %v152_v1  ;;  %v597_v1 = vld [vmem:[%s1624_s5 + $0x8] sm:$0xff]  ;;  %v598_v2 = vld [vmem:[%s1624_s5 + $0x10] sm:$0xff]  ;;  %v599_v3 = vld [vmem:[%s1624_s5 + $0x18] sm:$0xff]  ;;  %v607_v6 = vpop.permute.xlu0 %606 }
 0x134   :  { %v424_v9 = vmax.f32 %v398_v5, 0.0  ;;  %v612_v5 = vpop.permute.xlu1 %611 }
 0x135   :  { %v423_v11 = vmax.f32 %v393_v8, 0.0  ;;  %v1038_v12 = vpop.f32.mrb[14].mxu0  ;;  %1185 = vmatprep.subr.bf16.mxu1 %v1184_v7 }
 0x136   :  { %v408_v14 = vadd.f32 %v1038_v12, %v167_v10  ;;  %v402_v15 = vpop.f32.mrb[15].mxu0  ;;  %1187 = vmatpush3.bf16.msra.mxu1 %v1184_v7 }
 0x137   :  { %v1188_v16 = vpack.c.bf16 %v424_v9, %v423_v11  ;;  %v403_v17 = vadd.f32 %v402_v15, %v162_v13  ;;  %v617_v15 = vpop.permute.xlu0 %616 }
 0x138   :  { %v426_v18 = vmax.f32 %v408_v14, 0.0  ;;  %v622_v12 = vpop.permute.xlu1 %621 }
 0x139   :  { %v425_v19 = vmax.f32 %v403_v17, 0.0  ;;  %1189 = vmatprep.subr.bf16.mxu1 %v1188_v16 }
 0x13a   :  { %1191 = vmatpush3.bf16.msra.mxu1 %v1188_v16 }
 0x13b   :  { %v1192_v20 = vpack.c.bf16 %v426_v18, %v425_v19 }
 0x13d   :  { %1193 = vmatprep.subr.bf16.mxu1 %v1192_v20 }
 0x13e   :  { %1195 = vmatpush3.bf16.msra.mxu1 %v1192_v20 }
 0x141   :  { %1072 = vmatmul.mubr.f32.vlgmr.msra.gmra.mrb[0].mxu1 %v428_v21 }
 0x142   :  { %1074 = vmatprep.mubr.f32.mxu1 %v429_v22 }
 0x145   :  { %1075 = vmatmul.mubr.f32.gmra.mrb[2].mxu1 %v430_v23  ;;  %v727_v23 = vld [vmem:[%s1626_s7 + $0x8] sm:$0xff]  ;;  %s1249_s7 = smov [#allocation3]  }
 0x146   :  { %1077 = vmatprep.mubr.f32.mxu1 %v431_v24  ;;  %v738_v24 = vpop.permute.xlu1 %737  ;;  %s863_s15 = sshll.u32 %s1249_s7, 4  ;;  %s864_s15 = int_to_ptr.vmem [resolvable:$true] %s863_s15 }
 0x147   :  { %s1224_s16 = scalar_lea.vmem %s864_s15, 16  ;;  %s1228_s17 = scalar_lea.vmem %s864_s15, 32 }
 0x148   :  { %p1225_p0 = scmp.ne.s32.totalorder %s864_s15, %s1224_s16  ;;  %p1229_p1 = scmp.lt.s32.totalorder %s864_s15, %s864_s15 }
 0x149   :  { %1078 = vmatmul.mubr.f32.gmra.mrb[4].mxu1 %v432_v25  ;;  %v733_v25 = vpop.permute.xlu0 %732  ;;  %p1230_p2 = scmp.lt.s32.totalorder %s1228_s17, %s1224_s16 }
 0x14a   :  { %1080 = vmatprep.mubr.f32.mxu1 %v433_v26 }
 0x14b   :  { %p1231_p3 = por %p1230_p2, %p1229_p1 }
 0x14d   :  { %1081 = vmatmul.mubr.f32.gmra.mrb[6].mxu1 %v434_v27  ;;  %p1232_p4 = pnand %p1231_p3, %p1225_p0 }
 0x14e   :  { %1099 = vmatprep.mubr.msk.f32.mxu1 %vm624_vm2, %v596_v28 }
 0x214   :  { %v1073_v32 = vpop.f32.mrb[0].mxu1 }
 0x215   :  { %v555_v34 = vadd.f32 %v1073_v32, %v451_v29  ;;  %v549_v35 = vpop.f32.mrb[1].mxu1 }
 0x216   :  { %v550_v36 = vadd.f32 %v549_v35, %v446_v30 }
 0x217   :  { %v589_v37 = vmax.f32 %v555_v34, 0.0 }
 0x218   :  { %v588_v38 = vmax.f32 %v550_v36, 0.0  ;;  %v1076_v39 = vpop.f32.mrb[2].mxu1  ;;  %v851_v36 = vlaneseq }
 0x219   :  { %v565_v40 = vadd.f32 %v1076_v39, %v461_v31  ;;  %v559_v41 = vpop.f32.mrb[3].mxu1  ;;  %v834_v31 = vpop.permute.xlu1 %833 }
 0x21a   :  { %v1196_v43 = vpack.c.bf16 %v589_v37, %v588_v38  ;;  %v560_v44 = vadd.f32 %v559_v41, %v456_v33  ;;  %v829_v33 = vpop.permute.xlu0 %828  ;;  %v852_v39 = vshrl.u32 %v851_v36, 7 }
 0x21b   :  { %v591_v46 = vmax.f32 %v565_v40, 0.0 }
 0x21c   :  { %v590_v47 = vmax.f32 %v560_v44, 0.0  ;;  %v1079_v48 = vpop.f32.mrb[4].mxu1  ;;  %1197 = vmatprep.subr.bf16.mxu1 %v1196_v43 }
 0x21d   :  { %v575_v49 = vadd.f32 %v1079_v48, %v471_v42  ;;  %v569_v50 = vpop.f32.mrb[5].mxu1  ;;  %1199 = vmatpush3.bf16.msra.mxu1 %v1196_v43  ;;  %v853_v42 = vsub.s32 0, %v852_v39 }
 0x21e   :  { %v1200_v51 = vpack.c.bf16 %v591_v46, %v590_v47  ;;  %v570_v52 = vadd.f32 %v569_v50, %v466_v45  ;;  %v849_v44 = vpop.permute.xlu0 %848 }
 0x21f   :  { %v593_v53 = vmax.f32 %v575_v49, 0.0  ;;  %v854_v46 = vrot.slane %v849_v44, %v853_v42 }
 0x220   :  { %v592_v55 = vmax.f32 %v570_v52, 0.0  ;;  %v1082_v56 = vpop.f32.mrb[6].mxu1  ;;  %1201 = vmatprep.subr.bf16.mxu1 %v1200_v51 }
 0x221   :  { %v585_v58 = vadd.f32 %v1082_v56, %v481_v54  ;;  %v579_v59 = vpop.f32.mrb[7].mxu1  ;;  %1203 = vmatpush3.bf16.msra.mxu1 %v1200_v51 }
 0x222   :  { %v1204_v60 = vpack.c.bf16 %v593_v53, %v592_v55  ;;  %v580_v61 = vadd.f32 %v579_v59, %v476_v57 }
 0x223   :  { %v595_v62 = vmax.f32 %v585_v58, 0.0 }
 0x224   :  { %v594_v63 = vmax.f32 %v580_v61, 0.0  ;;  %1205 = vmatprep.subr.bf16.mxu1 %v1204_v60 }
 0x225   :  { %1207 = vmatpush3.bf16.msra.mxu1 %v1204_v60 }
 0x226   :  { %v1208_v0 = vpack.c.bf16 %v595_v62, %v594_v63 }
 0x228   :  { %1209 = vmatprep.subr.bf16.mxu1 %v1208_v0 }
 0x229   :  { %1211 = vmatpush3.bf16.msra.mxu1 %v1208_v0 }
 0x22c   :  { %1100 = vmatmul.mubr.msk.f32.vlgmr.msra.gmra.mrb[8].mxu1 %vm624_vm2, %v597_v1 }
 0x22d   :  { %1102 = vmatprep.mubr.msk.f32.mxu1 %vm624_vm2, %v598_v2 }
 0x230   :  { %1103 = vmatmul.mubr.msk.f32.gmra.mrb[10].mxu1 %vm624_vm2, %v599_v3 }
 0x231   :  { %1113 = vmatprep.mubr.msk.f32.mxu1 %vm740_vm3, %v726_v4 }
 0x2ff   :  { %v1101_v7 = vpop.f32.mrb[8].mxu1 }
 0x300   :  { %v709_v8 = vadd.f32 %v1101_v7, %v612_v5  ;;  %v703_v9 = vpop.f32.mrb[9].mxu1 }
 0x301   :  { %v704_v10 = vadd.f32 %v703_v9, %v607_v6 }
 0x302   :  { %v723_v11 = vmax.f32 %v709_v8, 0.0 }
 0x303   :  { %v722_v13 = vmax.f32 %v704_v10, 0.0  ;;  %v1104_v14 = vpop.f32.mrb[10].mxu1 }
 0x304   :  { %v719_v16 = vadd.f32 %v1104_v14, %v622_v12  ;;  %v713_v17 = vpop.f32.mrb[11].mxu1 }
 0x305   :  { %v1212_v18 = vpack.c.bf16 %v723_v11, %v722_v13  ;;  %v714_v19 = vadd.f32 %v713_v17, %v617_v15 }
 0x306   :  { %v725_v20 = vmax.f32 %v719_v16, 0.0 }
 0x307   :  { %v724_v21 = vmax.f32 %v714_v19, 0.0  ;;  %1213 = vmatprep.subr.bf16.mxu1 %v1212_v18 }
 0x308   :  { %1215 = vmatpush3.bf16.msra.mxu1 %v1212_v18 }
 0x309   :  { %v1216_v22 = vpack.c.bf16 %v725_v20, %v724_v21 }
 0x30b   :  { %1217 = vmatprep.subr.bf16.mxu1 %v1216_v22 }
 0x30c   :  { %1219 = vmatpush3.bf16.msra.mxu1 %v1216_v22 }
 0x30f   :  { %1114 = vmatmul.mubr.msk.f32.vlgmr.msra.gmra.mrb[12].mxu1 %vm740_vm3, %v727_v23 }
 0x3e2   :  { %v1115_v26 = vpop.f32.mrb[12].mxu1 }
 0x3e3   :  { %v819_v27 = vadd.f32 %v1115_v26, %v738_v24  ;;  %v813_v28 = vpop.f32.mrb[13].mxu1 }
 0x3e4   :  { %v814_v29 = vadd.f32 %v813_v28, %v733_v25 }
 0x3e5   :  { %v823_v30 = vmax.f32 %v819_v27, 0.0 }
 0x3e6   :  { %v822_v32 = vmax.f32 %v814_v29, 0.0 }
 0x3e7   :  { %v837_v34 = vmul.f32 %v834_v31, %v823_v30 }
 0x3e8   :  { %v836_v35 = vmul.f32 %v829_v33, %v822_v32 }
 0x3ea   :  { %v838_v37 = vadd.f32 %v837_v34, %v836_v35 }
 0x3ec   :  { %v839_v38 = vrot.slane %v838_v37, 4 }
 0x3ee   :  { %v840_v40 = vadd.f32 %v839_v38, %v838_v37 }
 0x3f0   :  { %v841_v41 = vrot.slane %v840_v40, 2 }
 0x3f2   :  { %v842_v43 = vadd.f32 %v841_v41, %v840_v40 }
 0x3f4   :  { %v843_v45 = vrot.slane %v842_v43, 1 }
 0x3f6   :  { %v844_v47 = vadd.f32 %v843_v45, %v842_v43 }
 0x3f8   :  { %v855_v48 = vadd.f32 %v854_v46, %v844_v47 }
 0x3fa   :  { %856 = vst [vmem:[#allocation3] sm:$0x1] %v855_v48 }
 0x3fb   :  { %1235 = shalt.err (!%p1232_p4)
}
 0x3fc   :  { %s1236_s8 = scalar_lea.hbm %s1630_s11, 16 }
 0x3fd   :  { %p1237_p5 = scmp.ne.s32.totalorder %s1630_s11, %s1236_s8  ;;  %p1240_p6 = scmp.lt.u32.totalorder %s1236_s8, %s1630_s11 }
 0x3ff   :  { %p1242_p7 = pnand %p1240_p6, %p1237_p5 }
 0x401   :  { %1245 = shalt.err (!%p1242_p7)
}
 0x402   :  { %866 = dma.vmem_to_hbm [thread:$0]  %s864_s15, 16, %s1630_s11, [#allocation4]  }
 0x403   :  { %1246 = dma.done.wait [#allocation4], 16  }
 0x404   :  { %1247 = vsyncadd [#allocation4], 4294967280 }
 0x405   :  { %870 = vsyncpa [#allocation4], 1 }

</bundles_post_ra>
